<compile_context>
chip_gen: v7x
topology: tpu7x:2x2x1
jax: 0.10.0
libtpu: 0.0.40
codegen_flags: <defaults>
</compile_context>

<pallas_src>
import functools
from typing import NamedTuple

import jax
import jax.numpy as jnp
from jax import lax
from jax.experimental import pallas as pl
from jax.experimental.pallas import tpu as pltpu


def _round_up(x: int, m: int) -> int:
    return (x + m - 1) // m * m


def _cdiv(a: int, b: int) -> int:
    return -(-a // b)


class PackedParams(NamedTuple):
    w: jax.Array            # (K, n_out_pad) f32, block-diagonal combined weights
    b: jax.Array            # (1, n_out_pad) f32, bias row (numeric biases, zeros elsewhere)
    num_numeric: int
    num_categorical: int
    max_card: int
    state_size: int
    n_out: int              # unpadded output width = (Nn + Nc) * S


def pack_params(num_w, num_b, emb_tables, state_size: int) -> PackedParams:
    """One-time parameter repacking (layout plumbing, hoisted out of the forward path).

    Row order of W matches A = [onehot | numeric]; column order matches
    torch.cat(numeric + categorical) so no in-kernel permute is needed.
    """
    nn_ = int(num_w.shape[0])
    nc = int(emb_tables.shape[0])
    cmax = int(emb_tables.shape[1]) if nc > 0 else 0
    s = int(state_size)
    n_out = (nn_ + nc) * s

    # Pad output width to a multiple of 128 only when cheap (<= ~12.5% extra HBM
    # writes on this write-bound kernel); otherwise keep the exact width.
    n_out_pad = _round_up(n_out, 128)
    if (n_out_pad - n_out) * 8 > n_out:
        n_out_pad = n_out

    k_dim = nc * cmax + nn_
    w = jnp.zeros((k_dim, n_out_pad), jnp.float32)
    b = jnp.zeros((1, n_out_pad), jnp.float32)

    # Rows [0, Nc*Cmax): block-diagonal embedding tables -> categorical output cols.
    if nc > 0:
        eye_c = jnp.eye(nc, dtype=jnp.float32)
        w_emb = (eye_c[:, None, :, None]
                 * emb_tables.astype(jnp.float32)[:, :, None, :]).reshape(nc * cmax, nc * s)
        w = w.at[:nc * cmax, nn_ * s:(nn_ + nc) * s].set(w_emb)

    # Rows [Nc*Cmax, K): block-diagonal Linear(1, S) weights -> numeric output cols.
    if nn_ > 0:
        eye_n = jnp.eye(nn_, dtype=jnp.float32)
        w_num = (eye_n[:, :, None]
                 * num_w.astype(jnp.float32)[:, None, :]).reshape(nn_, nn_ * s)
        w = w.at[nc * cmax:, :nn_ * s].set(w_num)
        b = b.at[0, :nn_ * s].set(num_b.astype(jnp.float32).reshape(nn_ * s))

    return PackedParams(w, b, nn_, nc, cmax, s, n_out)


def _input_channel_embedding_kernel(*refs, num_numeric: int, num_categorical: int,
                                    max_card: int):
    it = iter(refs)
    x_num_ref = next(it) if num_numeric > 0 else None      # (TB, Nn)       f32
    x_cat_ref = next(it) if num_categorical > 0 else None  # (TB, Nc)       i32
    w_ref = next(it)                                        # (K, Npad)      f32 (resident)
    bias_ref = next(it)                                     # (1, Npad)      f32 (resident)
    o_ref = next(it)                                        # (TB, Npad)     f32

    parts = []

    # One-hot block FIRST (lane offset 0): only the tiny numeric block gets
    # lane-shifted by the concatenate.  O(Nc*Cmax*TB) compares total.
    if num_categorical > 0:
        x_cat = x_cat_ref[...]                                           # (TB, Nc) i32
        tb = x_cat.shape[0]
        col = lax.broadcasted_iota(jnp.int32, (tb, max_card), 1)         # (TB, Cmax)
        for j in range(num_categorical):                                 # static, small
            parts.append((col == x_cat[:, j:j + 1]).astype(jnp.float32)) # (TB, Cmax)

    if num_numeric > 0:
        parts.append(x_num_ref[...])                                     # (TB, Nn)

    a = parts[0] if len(parts) == 1 else jnp.concatenate(parts, axis=1)  # (TB, K)

    # One fused MXU matmul produces the whole concatenated output slab.
    acc = jnp.dot(a, w_ref[...], preferred_element_type=jnp.float32)     # (TB, Npad)
    o_ref[...] = acc + bias_ref[...]                                     # single wide store


def input_channel_embedding(x_numeric, x_categorical, packed: PackedParams, *,
                            block_batch=None,
                            vmem_budget_bytes=40 * 1024 * 1024):
    """Pallas-backed forward for InputChannelEmbedding (time_distribute=False)."""
    nn_, nc = packed.num_numeric, packed.num_categorical
    cmax = packed.max_card
    n_out = packed.n_out
    k_dim, n_out_pad = (int(d) for d in packed.w.shape)
    if nn_ + nc < 1:
        raise ValueError("At least one input variable (numeric or categorical) required.")

    batch = int(x_numeric.shape[0]) if nn_ > 0 else int(x_categorical.shape[0])

    # ---- batch tile selection (VMEM-budgeted, padding-aware, >=2 grid steps) ----
    fixed_bytes = 2 * k_dim * n_out_pad * 4 + 2 * 8 * n_out_pad * 4       # resident W + bias
    per_row_bytes = 2 * n_out_pad * 4                                     # output stream (2 bufs)
    per_row_bytes += (2 * 128 * 4) * (int(nn_ > 0) + int(nc > 0))         # input streams (lane-padded)
    per_row_bytes += 2 * max(_round_up(max(k_dim, 1), 128), 128) * 4      # in-kernel A / one-hot temps

    if block_batch is not None:
        tb = _round_up(int(block_batch), 8)
    else:
        tb_max = max((vmem_budget_bytes - fixed_bytes) // per_row_bytes, 8)
        tb_max = max(min(1024, tb_max) // 8 * 8, 8)
        n_tiles = _cdiv(batch, tb_max)
        if n_tiles < 2 and batch > 8:
            n_tiles = 2          # >=2 grid steps -> v7x's second TensorCore gets work
        tb = min(_round_up(_cdiv(batch, n_tiles), 8), tb_max)
    b_pad = _round_up(batch, tb)
    grid = (b_pad // tb,)

    vmem_est = fixed_bytes + tb * per_row_bytes
    vmem_limit = int(min(max(int(vmem_est * 1.5), 16 * 1024 * 1024), 64 * 1024 * 1024))

    # ---- inputs / specs --------------------------------------------------------
    inputs, in_specs = [], []
    if nn_ > 0:
        x_num = jnp.pad(x_numeric.astype(jnp.float32), ((0, b_pad - batch), (0, 0)))
        inputs.append(x_num)
        in_specs.append(pl.BlockSpec((tb, nn_), lambda i: (i, 0)))
    if nc > 0:
        # pad with id 0 (always valid); padded rows are sliced off below.
        x_cat = jnp.pad(x_categorical.astype(jnp.int32), ((0, b_pad - batch), (0, 0)))
        inputs.append(x_cat)
        in_specs.append(pl.BlockSpec((tb, nc), lambda i: (i, 0)))
    inputs += [packed.w, packed.b]
    in_specs += [pl.BlockSpec((k_dim, n_out_pad), lambda i: (0, 0)),   # VMEM-resident
                 pl.BlockSpec((1, n_out_pad), lambda i: (0, 0))]       # VMEM-resident

    kernel = functools.partial(
        _input_channel_embedding_kernel,
        num_numeric=nn_, num_categorical=nc, max_card=cmax,
    )

    out = pl.pallas_call(
        kernel,
        out_shape=jax.ShapeDtypeStruct((b_pad, n_out_pad), jnp.float32),
        grid=grid,
        in_specs=in_specs,
        out_specs=pl.BlockSpec((tb, n_out_pad), lambda i: (i, 0)),
        compiler_params=pltpu.CompilerParams(
            dimension_semantics=("parallel",),
            vmem_limit_bytes=vmem_limit,
        ),
    )(*inputs)
    return out[:batch, :n_out]


if __name__ == "__main__":
    key = jax.random.PRNGKey(0)
    B = 30                      # not a multiple of 8 -> exercises padding-aware tiling
    state_size = 32
    num_numeric = 3
    num_categorical = 2
    cardinalities = [5, 7]
    max_card = max(cardinalities)

    k_xn, k_xc, k_w, k_b, k_e = jax.random.split(key, 5)

    # Inputs (deterministic).
    x_numeric = jax.random.normal(k_xn, (B, num_numeric), dtype=jnp.float32)
    x_categorical = jnp.stack(
        [jax.random.randint(jax.random.fold_in(k_xc, j), (B,), 0, c)
         for j, c in enumerate(cardinalities)], axis=1).astype(jnp.int32)

    # Parameters (deterministic init).
    # nn.Linear(1, S): weight (S, 1) flattened to (S,), bias (S,), one per variable.
    num_w = 0.1 * jax.random.normal(k_w, (num_numeric, state_size), dtype=jnp.float32)
    num_b = 0.1 * jax.random.normal(k_b, (num_numeric, state_size), dtype=jnp.float32)

    # nn.Embedding(card_j, S), zero-padded to a common max cardinality.
    emb_tables = jnp.zeros((num_categorical, max_card, state_size), jnp.float32)
    for j, c in enumerate(cardinalities):
        tbl = jax.random.normal(jax.random.fold_in(k_e, j), (c, state_size),
                                dtype=jnp.float32)
        emb_tables = emb_tables.at[j, :c, :].set(tbl)

    # Parameter repacking hoisted out of the per-forward path (done once).
    packed = pack_params(num_w, num_b, emb_tables, state_size)
    packed = jax.tree_util.tree_map(
        lambda x: jax.block_until_ready(x) if isinstance(x, jax.Array) else x, packed)

    out = input_channel_embedding(x_numeric, x_categorical, packed)
    out = jax.block_until_ready(out)

    # Pure-JAX reference (same semantics as the PyTorch forward).
    ref_parts = []
    for i in range(num_numeric):
        ref_parts.append(x_numeric[:, i:i + 1] * num_w[i][None, :] + num_b[i][None, :])
    for j in range(num_categorical):
        ref_parts.append(emb_tables[j][x_categorical[:, j]])
    ref = jnp.concatenate(ref_parts, axis=1)

    assert out.shape == (B, (num_numeric + num_categorical) * state_size), out.shape
    max_err = float(jnp.abs(out - ref).max())
    assert jnp.allclose(out, ref, atol=2e-5, rtol=2e-5), max_err
    print("KERNEL_OK")
</pallas_src>

<mosaic_0001>
module attributes {stable_mosaic.version = 11 : i64} {
  func.func @_input_channel_embedding_kernel(%arg0: i32, %arg1: memref<16x3xf32, #tpu.memory_space<vmem>>, %arg2: memref<16x2xi32, #tpu.memory_space<vmem>>, %arg3: memref<17x160xf32, #tpu.memory_space<vmem>>, %arg4: memref<1x160xf32, #tpu.memory_space<vmem>>, %arg5: memref<16x160xf32, #tpu.memory_space<vmem>>) attributes {dimension_semantics = [#tpu.dimension_semantics<parallel>], iteration_bounds = array<i64: 2>, scalar_prefetch = 0 : i64, scratch_operands = 0 : i64, tpu.core_type = #tpu.core_type<tc>, window_params = [{transform_indices = @transform_0, window_bounds = array<i64: 16, 3>}, {transform_indices = @transform_1, window_bounds = array<i64: 16, 2>}, {pipeline_mode = #tpu.pipeline_mode<synchronous>, transform_indices = @transform_2, window_bounds = array<i64: 17, 160>}, {pipeline_mode = #tpu.pipeline_mode<synchronous>, transform_indices = @transform_3, window_bounds = array<i64: 1, 160>}, {transform_indices = @transform_4, window_bounds = array<i64: 16, 160>}]} {
    %c0 = arith.constant 0 : index
    %c0_0 = arith.constant 0 : index
    %0 = vector.load %arg2[%c0, %c0_0] : memref<16x2xi32, #tpu.memory_space<vmem>>, vector<16x2xi32>
    %1 = tpu.iota {dimensions = array<i32: 1>} : vector<16x7xi32>
    %2 = vector.extract_strided_slice %0 {offsets = [0, 0], sizes = [16, 1], strides = [1, 1]} : vector<16x2xi32> to vector<16x1xi32>
    %3 = vector.broadcast %2 : vector<16x1xi32> to vector<16x7xi32>
    %4 = arith.cmpi eq, %1, %3 : vector<16x7xi32>
    %5 = arith.extui %4 : vector<16x7xi1> to vector<16x7xi32>
    %6 = arith.sitofp %5 : vector<16x7xi32> to vector<16x7xf32>
    %7 = vector.extract_strided_slice %0 {offsets = [0, 1], sizes = [16, 1], strides = [1, 1]} : vector<16x2xi32> to vector<16x1xi32>
    %8 = vector.broadcast %7 : vector<16x1xi32> to vector<16x7xi32>
    %9 = arith.cmpi eq, %1, %8 : vector<16x7xi32>
    %10 = arith.extui %9 : vector<16x7xi1> to vector<16x7xi32>
    %11 = arith.sitofp %10 : vector<16x7xi32> to vector<16x7xf32>
    %c0_1 = arith.constant 0 : index
    %c0_2 = arith.constant 0 : index
    %12 = vector.load %arg1[%c0_1, %c0_2] : memref<16x3xf32, #tpu.memory_space<vmem>>, vector<16x3xf32>
    %13 = tpu.concatenate %6, %11, %12 in 1 : vector<16x7xf32>, vector<16x7xf32>, vector<16x3xf32> -> vector<16x17xf32>
    %c0_3 = arith.constant 0 : index
    %c0_4 = arith.constant 0 : index
    %14 = vector.load %arg3[%c0_3, %c0_4] : memref<17x160xf32, #tpu.memory_space<vmem>>, vector<17x160xf32>
    %cst = arith.constant dense<0.000000e+00> : vector<16x160xf32>
    %15 = tpu.matmul %13, %14, %cst {dimension_numbers = #tpu.dot_dimension_numbers<[1], [0], [0], [1], [0, 0, 1, 1], [], []>} : vector<16x17xf32>, vector<17x160xf32>, vector<16x160xf32> -> vector<16x160xf32>
    %c0_5 = arith.constant 0 : index
    %c0_6 = arith.constant 0 : index
    %16 = vector.load %arg4[%c0_5, %c0_6] : memref<1x160xf32, #tpu.memory_space<vmem>>, vector<1x160xf32>
    %17 = vector.broadcast %16 : vector<1x160xf32> to vector<16x160xf32>
    %18 = arith.addf %15, %17 : vector<16x160xf32>
    %c0_7 = arith.constant 0 : index
    %c0_8 = arith.constant 0 : index
    %19 = vector.load %arg5[%c0_7, %c0_8] : memref<16x160xf32, #tpu.memory_space<vmem>>, vector<16x160xf32>
    tpu.vector_store %arg5[%c0_7, %c0_8], %18 {strides = array<i32>} : memref<16x160xf32, #tpu.memory_space<vmem>>, vector<16x160xf32>,
    return
  }
  func.func @transform_0(%arg0: i32) -> (i32, i32) {
    %c0_i32 = arith.constant 0 : i32
    %c0_i32_0 = arith.constant 0 : i32
    return %arg0, %c0_i32 : i32, i32
  }
  func.func @transform_1(%arg0: i32) -> (i32, i32) {
    %c0_i32 = arith.constant 0 : i32
    %c0_i32_0 = arith.constant 0 : i32
    return %arg0, %c0_i32 : i32, i32
  }
  func.func @transform_2(%arg0: i32) -> (i32, i32) {
    %c0_i32 = arith.constant 0 : i32
    %c0_i32_0 = arith.constant 0 : i32
    %c0_i32_1 = arith.constant 0 : i32
    return %c0_i32, %c0_i32_0 : i32, i32
  }
  func.func @transform_3(%arg0: i32) -> (i32, i32) {
    %c0_i32 = arith.constant 0 : i32
    %c0_i32_0 = arith.constant 0 : i32
    %c0_i32_1 = arith.constant 0 : i32
    return %c0_i32, %c0_i32_0 : i32, i32
  }
  func.func @transform_4(%arg0: i32) -> (i32, i32) {
    %c0_i32 = arith.constant 0 : i32
    %c0_i32_0 = arith.constant 0 : i32
    return %arg0, %c0_i32 : i32, i32
  }
}

</mosaic_0001>

<bundles_post_ra>
// kernel: tpu_custom_call.1
= control target key start
LH: loop header
LB: loop body
LE: loop exit
PB: predicated region body
PF: predicated region fallthrough
CT: control target
= control target key end

     0   :  { %9 = vsyncpa [#allocation3], 0  ;;  %s791_s0 = inlined_call_operand.vmem [shape: f32[32,3], index: 0, kind: input, shape index: {}]   ;;  %s792_s1 = inlined_call_operand.vmem [shape: s32[32,2], index: 1, kind: input, shape index: {}]   ;;  %s793_s2 = inlined_call_operand.vmem [shape: f32[17,160], index: 2, kind: input, shape index: {}]   ;;  %s794_s3 = inlined_call_operand.vmem [shape: f32[1,160], index: 3, kind: input, shape index: {}]   ;;  %s795_s4 = inlined_call_operand.hbm [shape: f32[32,160], index: 4, kind: output, shape index: {}]  }
   0x1   :  { %11 = vsyncpa [#allocation3 + $0x1], 0  ;;  %s659_s15 = smov 0   ;;  %s661_s16 = smov 0  }
   0x2   :  { %s663_s17 = smov 0   ;;  %s665_s18 = smov 0  }
   0x3 LB: > { %s680_s19 = sadd.s32 4294967295, %s624_s18   ;;  %s476_s20 = sadd.s32 4294967294, %s624_s18   ;;  %s624_s18 = sphi %s665_s18, %s801_s18   ;;  %s620_s17 = sphi %s663_s17, %s800_s17   ;;  %s616_s16 = sphi %s661_s16, %s799_s16   ;;  %s612_s15 = sphi %s659_s15, %s798_s15  }
   0x4   : > { %s684_s21 = sadd.s32 1, %s624_s18   ;;  %s118_s22 = sadd.s32 1, %s620_s17 }
   0x5   : > { %s115_s23 = ssub.s32 %s624_s18, %s684_s21  ;;  %p128_p0 = scmp.ne.s32.totalorder %s620_s17, %s616_s16 }
   0x6   : > { %p116_p1 = scmp.eq.s32.totalorder %s115_s23, 0  ;;  %p129_p2 = scmp.eq.s32.totalorder %s680_s19, 1 }
   0x7   : > { %p134_p3 = scmp.ne.s32.totalorder %s616_s16, %s612_s15  ;;  %p135_p4 = scmp.eq.s32.totalorder %s476_s20, 1 }
   0x8   : > { %s695_s24 = scalar_select %p116_p1, %s620_s17, %s118_s22  }
   0x9   : > { %p697_p5 = por %p129_p2, %p128_p0  ;;  %p701_p6 = por %p135_p4, %p134_p3 }
   0xa   : > { %p479_p7 = scmp.ge.s32.totalorder %s624_s18, 1  ;;  %p177_p8 = scmp.lt.s32.totalorder %s624_s18, 3 }
   0xc   : > { %p178_p9 = pnand %p479_p7, %p177_p8 }
   0xd   : > { %s481_s27 = sshll.u32 (!%p178_p9), %s680_s19, 1  ;;  %v626_v0 = vmov (!%p178_p9), 1   ;;  %v627_v1 = vmov (!%p178_p9), 0   ;;  %v628_v2 = vmov (!%p178_p9), 0.0   ;;  %s629_s9 = smov (!%p178_p9), 14   ;;  %v274_v6 = vld [vmem:[%s793_s2 + $0x8] sm:$0xff] (!%p178_p9)  ;;  %v223_v12 = vlaneseq (!%p178_p9) }
   0xe   : > { %181 = sbr.rel (%p178_p9) target bundleno = 511 (0x1ff), region = 36  ;;  %555 = vset.pattern.permute.xlu0 (!%p178_p9), %v626_v0  ;;  %p209_p10 = scmp.lt.s32.totalorder (!%p178_p9), %s481_s27, 3  ;;  %556 = vset.pattern.permute.xlu1 (!%p178_p9), %v627_v1  ;;  %v276_v7 = vld [vmem:[%s793_s2 + $0x18] sm:$0xff] (!%p178_p9)  ;;  %v273_v8 = vld [vmem:[%s793_s2] sm:$0xff] (!%p178_p9)  ;;  %v275_v10 = vld [vmem:[%s793_s2 + $0x10] sm:$0xff] (!%p178_p9)  ;;  %vm298_vm0 = vcmask (!%p178_p9), 1040384  }
   0xf   : > { %369 = vmatprep.mubr.f32.mxu0 (!%p178_p9), %v628_v2  ;;  %375 = vmatprep.mubr.f32.mxu1 (!%p178_p9), %v628_v2  ;;  %v501_v9 = vpack.c.bf16 (!%p178_p9), %v276_v7, %v274_v6  ;;  %v503_v11 = vpack.c.bf16 (!%p178_p9), %v275_v10, %v273_v8  ;;  %v278_v13 = vld [vmem:[%s793_s2 + $0x28] sm:$0x1] (!%p178_p9)  ;;  %v277_v14 = vld [vmem:[%s793_s2 + $0x20] sm:$0x1] (!%p178_p9)  ;;  %v224_v15 = vand.u32 (!%p178_p9), 127, %v223_v12  ;;  %vm267_vm5 = vcmask (!%p178_p9), 56320  }
  0x10   : > { %vm270_vm6 = vcmask (!%p178_p9), 113664   ;;  %vm291_vm7 = vcmask (!%p178_p9), 138240   ;;  %v282_v35 = vshrl.u32 (!%p178_p9), %v223_v12, 7  ;;  %s205_s6 = sand.u32 (!%p178_p9), 1, %s616_s16   ;;  %v279_v37 = vld [vmem:[%s794_s3] sm:$0x3] (!%p178_p9) }
  0x11   : > { %502 = vmatprep.subr.bf16.mxu0 (!%p178_p9), %v501_v9  ;;  %505 = vmatprep.subr.bf16.mxu1 (!%p178_p9), %v501_v9  ;;  %s480_s7 = sshll.u32 (!%p178_p9), %s205_s6, 5  ;;  %s500_s12 = sshll.u32 (!%p178_p9), %s680_s19, 9  ;;  %vm383_vm8 = vcmask (!%p178_p9), 261120  }
  0x12   : > { %504 = vmatpush1.bf16.msra.mxu0 (!%p178_p9), %v503_v11  ;;  %507 = vmatpush1.bf16.msra.mxu1 (!%p178_p9), %v503_v11  ;;  %v283_v36 = vsub.s32 (!%p178_p9), 0, %v282_v35  ;;  %v287_v38 = vsub.s32 (!%p178_p9), 1, %v282_v35  ;;  %s207_s10 = scalar_lea.vmem (!%p178_p9), [#allocation2], %s480_s7  ;;  %s748_s20 = scalar_lea.hbm (!%p178_p9), %s795_s4, %s500_s12 }
  0x13   : > { %489 = vmatprep.subr.msk.mxu0 (!%p178_p9), %vm298_vm0, %v278_v13  ;;  %506 = vmatprep.subr.msk.mxu1 (!%p178_p9), %vm298_vm0, %v278_v13  ;;  %s402_s11 = sshll.u32 (!%p178_p9), %s207_s10, 4  ;;  %s750_s19 = scalar_lea.sflag (!%p178_p9), [#allocation3], %s205_s6  ;;  %s743_s11 = int_to_ptr.vmem [resolvable:$true] %s402_s11 }
  0x14   : > { %v284_v39 = vrot.slane (!%p178_p9), %v279_v37, %v283_v36  ;;  %v288_v40 = vrot.slane (!%p178_p9), %v279_v37, %v287_v38  ;;  %s562_s22 = scalar_lea.vmem (!%p178_p9), %s743_s11, 512  ;;  %s631_s23 = smov (!%p178_p9), [#allocation2]  }
  0x15   : > { %s803_s27 = smov (!%p209_p10, %s481_s27), 3  ;;  %p563_p11 = scmp.ne.s32.totalorder %s743_s11, %s562_s22 }
  0x16   : > { %s482_s28 = sshll.u32 %s803_s27, 3  ;;  %490 = vmatpush1.msk.msra.mxu0 %vm298_vm0, %v277_v14  ;;  %508 = vmatpush1.msk.msra.mxu1 %vm298_vm0, %v277_v14  ;;  %s566_s27 = sshll.u32 %s631_s23, 4  ;;  %s567_s27 = int_to_ptr.vmem [resolvable:$false] %s566_s27 }
  0x17   : > { %s218_s5 = scalar_lea.vmem %s792_s1, %s482_s28  ;;  %s714_s8 = scalar_lea.vmem %s791_s0, %s482_s28 }
  0x18   : > { %v221_v3 = vld [vmem:[%s218_s5] sm:$0xff]  ;;  %v222_v4 = vld [vmem:[%s218_s5 + $0x8] sm:$0xff]  ;;  %s630_s5 = smov 7   ;;  %p564_p12 = pnand %p563_p11, %p697_p5 }
  0x19   : > { %238 = vperm.xlu0 %555, %v221_v3   ;;  %226 = vperm.xlu1 %556, %v221_v3   ;;  %v249_v5 = vld [vmem:[%s714_s8] sm:$0xff]  ;;  %v250_v21 = vld [vmem:[%s714_s8 + $0x8] sm:$0xff]  ;;  %s568_s28 = scalar_lea.vmem %s567_s27, 1024  ;;  %p569_p0 = scmp.lt.s32.totalorder %s743_s11, %s567_s27 }
  0x1a   : > { %p565_p13 = pneg %p564_p12  ;;  %p570_p1 = scmp.lt.s32.totalorder %s568_s28, %s562_s22 }
  0x1c   : > { %p571_p2 = por %p570_p1, %p569_p0 }
  0x1d   : > { %241 = vperm.xlu0 %555, %v222_v4   ;;  %229 = vperm.xlu1 %556, %v222_v4  }
  0x1e   : > { %p572_p3 = pnand %p571_p2, %p565_p13 }
  0x21   : > { %261 = vrot.lane.b32.xlu1 %v249_v5, %s629_s9 }
  0x98   : > { %v239_v16 = vpop.permute.xlu0 %238  ;;  %v227_v22 = vpop.permute.xlu1 %226 }
  0x99   : > { %vm243_vm1 = vcmp.eq.s32.totalorder %v224_v15, %v239_v16  ;;  %vm231_vm3 = vcmp.eq.s32.totalorder %v224_v15, %v227_v22 }
  0x9a   : > { %v487_v18 = vsel %vm243_vm1, 1.0, %v628_v2  ;;  %v485_v28 = vsel %vm231_vm3, 1.0, %v628_v2 }
  0x9c   : > { %v242_v17 = vpop.permute.xlu0 %241  ;;  %v230_v23 = vpop.permute.xlu1 %229 }
  0x9d   : > { %vm244_vm2 = vcmp.eq.s32.totalorder %v224_v15, %v242_v17  ;;  %vm232_vm4 = vcmp.eq.s32.totalorder %v224_v15, %v230_v23 }
  0x9e   : > { %v488_v19 = vsel %vm244_vm2, 1.0, %v628_v2  ;;  %v486_v29 = vsel %vm232_vm4, 1.0, %v628_v2 }
  0x9f   : > { %v557_v20 = vpack.i.bf16 %v488_v19, %v487_v18 }
  0xa0   : > { %v262_v27 = vpop.permute.xlu1 %261 }
  0xa1   : > { %558 = vrot.lane.b32.xlu0 %v557_v20, %s630_s5 }
  0xa5   : > { %263 = vrot.lane.b32.xlu0 %v250_v21, %s629_s9 }
 0x113   : > { %v559_v24 = vpop.permute.xlu0 %558 }
 0x114   : > { %v561_v25 = vunpack.i.h.bf16 %v559_v24  ;;  %v560_v26 = vunpack.i.l.bf16 %v559_v24 }
 0x116   : > { %v268_v30 = vsel %vm267_vm5, %v485_v28, %v560_v26  ;;  %v269_v31 = vsel %vm267_vm5, %v486_v29, %v561_v25 }
 0x117   : > { %v271_v32 = vsel %vm270_vm6, %v268_v30, %v262_v27  ;;  %v264_v33 = vpop.permute.xlu0 %263 }
 0x118   : > { %v272_v34 = vsel %vm270_vm6, %v269_v31, %v264_v33  ;;  %491 = vmatmul.mubr.msk.f32.vlgmr.msra.gmra.mrb[0].mxu0 %vm291_vm7, %v271_v32 }
 0x119   : > { %492 = vmatmul.mubr.msk.f32.vlgmr.msra.gmra.mrb[0].mxu1 %vm291_vm7, %v272_v34 }
 0x1eb   : > { %v371_v41 = vpop.f32.mrb[0].mxu0 }
 0x1ec   : > { %v372_v42 = vadd.f32 %v371_v41, %v284_v39  ;;  %v373_v43 = vpop.f32.mrb[1].mxu0  ;;  %v377_v44 = vpop.f32.mrb[0].mxu1 }
 0x1ed   : > { %v374_v45 = vadd.f32 %v373_v43, %v288_v40  ;;  %v378_v46 = vadd.f32 %v377_v44, %v284_v39  ;;  %v379_v47 = vpop.f32.mrb[1].mxu1 }
 0x1ee   : > { %382 = vst [vmem:[%s207_s10] sm:$0xff] %v372_v42  ;;  %v380_v48 = vadd.f32 %v379_v47, %v288_v40 }
 0x1ef   : > { %384 = vst.msk [vmem:[%s207_s10 + $0x8] sm:$0xff] %vm383_vm8, %v374_v45  ;;  %385 = vst [vmem:[%s207_s10 + $0x10] sm:$0xff] %v378_v46 }
 0x1f0   : > { %386 = vst.msk [vmem:[%s207_s10 + $0x18] sm:$0xff] %vm383_vm8, %v380_v48 }
 0x1f1   : > { %575 = shalt.err (!%p572_p3)
}
 0x1f2   : > { %s576_s29 = scalar_lea.hbm %s748_s20, 512  ;;  %s580_s6 = scalar_lea.hbm %s795_s4, 1024 }
 0x1f3   : > { %p577_p4 = scmp.ne.s32.totalorder %s748_s20, %s576_s29  ;;  %p581_p9 = scmp.lt.u32.totalorder %s748_s20, %s795_s4 }
 0x1f4   : > { %p582_p10 = scmp.lt.u32.totalorder %s580_s6, %s576_s29  ;;  %p584_p12 = scmp.lt.u32.totalorder %s576_s29, %s748_s20 }
 0x1f5   : > { %p578_p7 = pnand %p577_p4, %p697_p5 }
 0x1f6   : > { %p583_p11 = por %p582_p10, %p581_p9 }
 0x1f7   : > { %p579_p8 = pneg %p578_p7 }
 0x1f8   : > { %p585_p13 = por %p584_p12, %p583_p11 }
 0x1fa   : > { %p586_p0 = pnand %p585_p13, %p579_p8 }
 0x1fc   : > { %589 = shalt.err (!%p586_p0)
}
 0x1fd   : > { %s632_s9 = smov 256   ;;  %s633_s10 = smov 16  }
 0x1fe   : > { %509 = dma.vmem_to_hbm [thread:$0]  (%p697_p5), %s743_s11, 512, %s748_s20, %s750_s19, %s632_s9, %s632_s9, %s633_s10  }
 0x1ff PF: > { %p515_p1 = scmp.ge.s32.totalorder %s624_s18, 2  ;;  %s417_s12 = sand.u32 1, %s612_s15  }
 0x200   : > { %s418_s13 = scalar_lea.sflag [#allocation3], %s417_s12 }
 0x201   : > { %p512_p2 = pnand %p515_p1, %p701_p6 }
 0x203   : > { %607 = dma.done.wait (!%p512_p2), %s418_s13, 512  }
 0x204   : > { %609 = vsyncadd (!%p512_p2), %s418_s13, 4294966784  ;;  %p14_p3 = scmp.ge.s32.totalorder %s684_s21, 4   ;;  %s798_s15 = smov %s616_s16 }
 0x205   : > { %s799_s16 = smov %s620_s17  ;;  %s800_s17 = smov %s695_s24 }
 0x206   : > { %s801_s18 = smov %s684_s21  ;;  %16 = sbr.rel (!%p14_p3) target bundleno = 3 (0x3), region = 74 }
 0x20d   :  { %423 = vsyncpa [#allocation3], 1 }
 0x20e   :  { %425 = vsyncpa [#allocation3 + $0x1], 1 }

</bundles_post_ra>
